<compile_context>
chip_gen: v6e
topology: v6e:2x2x1
jax: 0.10.0
libtpu: 0.0.40
codegen_flags: <defaults>
</compile_context>

<pallas_src>
import math
import jax
import jax.numpy as jnp
from jax.experimental import pallas as pl
from jax.experimental.pallas import tpu as pltpu

LN_EPS = 1e-5
GELU_K = math.sqrt(2.0 / math.pi)
VMEM_LIMIT = 48 * 1024 * 1024  # above default scoped limit, below physical on all gens


def _layernorm(h, w, b):
    mu = jnp.mean(h, axis=-1, keepdims=True)
    var = jnp.mean((h - mu) ** 2, axis=-1, keepdims=True)
    return (h - mu) * jax.lax.rsqrt(var + LN_EPS) * w + b


# --------------------------------------------------------------------------
# Kernel A: LN1 + fused QKV projection, output head-major bf16 q/k/v
# --------------------------------------------------------------------------
def make_qkv_kernel(C, n_head):
    D = C // n_head
    scale = 1.0 / math.sqrt(D)

    def kernel(x_ref, ln1w_ref, ln1b_ref, wattn_ref, battn_ref,
               q_ref, k_ref, v_ref):
        x = x_ref[0]                                          # (tq, C) f32
        h = _layernorm(x, ln1w_ref[...], ln1b_ref[...])       # f32 stats
        qkv = jnp.dot(h.astype(jnp.bfloat16), wattn_ref[...],
                      preferred_element_type=jnp.float32) + battn_ref[...]
        # One-time relayout to head-major (paid here, not in the attention loop).
        for hh in range(n_head):
            s0 = hh * D
            # fold the 1/sqrt(D) scale into q once
            q_ref[0, hh] = (qkv[:, s0:s0 + D] * scale).astype(jnp.bfloat16)
            k_ref[0, hh] = qkv[:, C + s0:C + s0 + D].astype(jnp.bfloat16)
            v_ref[0, hh] = qkv[:, 2 * C + s0:2 * C + s0 + D].astype(jnp.bfloat16)

    return kernel


# --------------------------------------------------------------------------
# Kernel B: flash attention (online softmax over kv tiles) + proj + residual
#           + LN2 + MLP + residual, fused at the last kv step.
# --------------------------------------------------------------------------
def make_attn_mlp_kernel(C, n_head, tq, tk):
    def kernel(x_ref, q_ref, k_ref, v_ref,
               wproj_ref, bproj_ref, ln2w_ref, ln2b_ref,
               wfc_ref, bfc_ref, wproj2_ref, bproj2_ref,
               out_ref, m_scr, l_scr, acc_scr):
        qi = pl.program_id(1)
        ki = pl.program_id(2)

        @pl.when(ki == 0)
        def _init():
            m_scr[...] = jnp.full_like(m_scr, -jnp.inf)
            l_scr[...] = jnp.zeros_like(l_scr)
            acc_scr[...] = jnp.zeros_like(acc_scr)

        # Skip kv blocks strictly above the causal diagonal (tq == tk).
        @pl.when(ki <= qi)
        def _update():
            q = q_ref[0]                                      # (H, tq, D) bf16 (pre-scaled)
            k = k_ref[0]                                      # (H, tk, D) bf16
            v = v_ref[0]                                      # (H, tk, D) bf16
            # Head-batched matmul; contraction on the last dim (no explicit .T).
            s = jnp.einsum('htd,hsd->hts', q, k,
                           preferred_element_type=jnp.float32)  # (H, tq, tk) f32
            row = qi * tq + jax.lax.broadcasted_iota(jnp.int32, (tq, tk), 0)
            col = ki * tk + jax.lax.broadcasted_iota(jnp.int32, (tq, tk), 1)
            s = jnp.where((col <= row)[None], s, -jnp.inf)
            m_prev = m_scr[...]
            m_new = jnp.maximum(m_prev, jnp.max(s, axis=-1, keepdims=True))
            alpha = jnp.exp(m_prev - m_new)
            p = jnp.exp(s - m_new)
            l_scr[...] = alpha * l_scr[...] + jnp.sum(p, axis=-1, keepdims=True)
            acc_scr[...] = alpha * acc_scr[...] + jnp.einsum(
                'hts,hsd->htd', p.astype(jnp.bfloat16), v,
                preferred_element_type=jnp.float32)
            m_scr[...] = m_new

        @pl.when(ki == pl.num_programs(2) - 1)
        def _finalize():
            x = x_ref[0]                                      # (tq, C) f32
            inv_l = pl.reciprocal(l_scr[...], approx=True)    # EUP
            y = acc_scr[...] * inv_l                          # (H, tq, D) f32
            # Accumulate each head straight into the output projection (no concat).
            attn = jnp.zeros((tq, C), jnp.float32) + bproj_ref[...]
            for h in range(n_head):
                attn = attn + jnp.dot(y[h].astype(jnp.bfloat16), wproj_ref[h],
                                      preferred_element_type=jnp.float32)
            x1 = x + attn

            h2 = _layernorm(x1, ln2w_ref[...], ln2b_ref[...])
            fc = jnp.dot(h2.astype(jnp.bfloat16), wfc_ref[...],
                         preferred_element_type=jnp.float32) + bfc_ref[...]
            g = 0.5 * fc * (1.0 + jnp.tanh(GELU_K * (fc + 0.044715 * fc * fc * fc)))
            mlp = jnp.dot(g.astype(jnp.bfloat16), wproj2_ref[...],
                          preferred_element_type=jnp.float32) + bproj2_ref[...]
            out_ref[0] = (x1 + mlp).astype(out_ref.dtype)

    return kernel


# --------------------------------------------------------------------------
# Wrapper
# --------------------------------------------------------------------------
def block_forward(x, params, n_head, *, seq_tile=None):
    (ln1w, ln1b, wattn, battn, wproj, bproj,
     ln2w, ln2b, wfc, bfc, wproj2, bproj2) = params
    B, T, C = x.shape
    D = C // n_head
    tq = seq_tile or min(T, 128)
    tk = tq  # equal q/kv tiles => no fully-masked rows inside a processed block
    assert T % tq == 0, "sequence length must be divisible by the tile size"

    # bf16 MXU operands (f32 accumulation kept inside the kernels)
    wattn_bf = wattn.astype(jnp.bfloat16)
    wproj3 = wproj.reshape(n_head, D, C).astype(jnp.bfloat16)   # head-sliced proj
    wfc_bf = wfc.astype(jnp.bfloat16)
    wproj2_bf = wproj2.astype(jnp.bfloat16)

    def const2d(shape):
        return pl.BlockSpec(shape, lambda b, i: (0, 0))

    # ---- Kernel A: LN1 + QKV projection → head-major bf16 q/k/v -----------
    q, k, v = pl.pallas_call(
        make_qkv_kernel(C, n_head),
        out_shape=[jax.ShapeDtypeStruct((B, n_head, T, D), jnp.bfloat16)] * 3,
        grid_spec=pltpu.PrefetchScalarGridSpec(
            num_scalar_prefetch=0,
            grid=(B, T // tq),
            in_specs=[
                pl.BlockSpec((1, tq, C), lambda b, i: (b, i, 0)),   # x
                const2d((1, C)), const2d((1, C)),                   # ln1 w, b
                const2d((C, 3 * C)), const2d((1, 3 * C)),           # c_attn W (bf16), b
            ],
            out_specs=[pl.BlockSpec((1, n_head, tq, D),
                                    lambda b, i: (b, 0, i, 0))] * 3,
        ),
        compiler_params=pltpu.CompilerParams(
            dimension_semantics=("parallel", "parallel"),
            vmem_limit_bytes=VMEM_LIMIT),
    )(x, ln1w, ln1b, wattn_bf, battn)

    def const_b(shape):
        return pl.BlockSpec(shape, lambda b, qi, ki: tuple(0 for _ in shape))

    # ---- Kernel B: flash attention + proj + residual + LN2 + MLP ----------
    out = pl.pallas_call(
        make_attn_mlp_kernel(C, n_head, tq, tk),
        out_shape=jax.ShapeDtypeStruct((B, T, C), jnp.float32),
        grid_spec=pltpu.PrefetchScalarGridSpec(
            num_scalar_prefetch=0,
            grid=(B, T // tq, T // tk),
            in_specs=[
                pl.BlockSpec((1, tq, C), lambda b, qi, ki: (b, qi, 0)),             # x (residual)
                pl.BlockSpec((1, n_head, tq, D), lambda b, qi, ki: (b, 0, qi, 0)),  # q
                pl.BlockSpec((1, n_head, tk, D), lambda b, qi, ki: (b, 0, ki, 0)),  # k
                pl.BlockSpec((1, n_head, tk, D), lambda b, qi, ki: (b, 0, ki, 0)),  # v
                const_b((n_head, D, C)),                                            # c_proj W (bf16)
                const_b((1, C)),                                                    # c_proj b
                const_b((1, C)), const_b((1, C)),                                   # ln2 w, b
                const_b((C, 4 * C)), const_b((1, 4 * C)),                           # c_fc W (bf16), b
                const_b((4 * C, C)), const_b((1, C)),                               # mlp c_proj W (bf16), b
            ],
            out_specs=pl.BlockSpec((1, tq, C), lambda b, qi, ki: (b, qi, 0)),
            scratch_shapes=[
                pltpu.VMEM((n_head, tq, 1), jnp.float32),   # m (running max)
                pltpu.VMEM((n_head, tq, 1), jnp.float32),   # l (running denom)
                pltpu.VMEM((n_head, tq, D), jnp.float32),   # acc (running numerator)
            ]),
        compiler_params=pltpu.CompilerParams(
            dimension_semantics=("parallel", "parallel", "arbitrary"),
            vmem_limit_bytes=VMEM_LIMIT),
    )(x, q, k, v, wproj3, bproj, ln2w, ln2b, wfc_bf, bfc, wproj2_bf, bproj2)

    return out


# --------------------------------------------------------------------------
# Pure-JAX f32 reference (mirrors the PyTorch Block forward)
# --------------------------------------------------------------------------
def reference_block(x, params, n_head):
    (ln1w, ln1b, wattn, battn, wproj, bproj,
     ln2w, ln2b, wfc, bfc, wproj2, bproj2) = params
    B, T, C = x.shape
    D = C // n_head

    def ln(h, w, b):
        mu = jnp.mean(h, axis=-1, keepdims=True)
        var = jnp.mean((h - mu) ** 2, axis=-1, keepdims=True)
        return (h - mu) / jnp.sqrt(var + 1e-5) * w + b

    h = ln(x, ln1w, ln1b)
    qkv = h @ wattn + battn
    q, k, v = jnp.split(qkv, 3, axis=-1)
    q = q.reshape(B, T, n_head, D).transpose(0, 2, 1, 3)
    k = k.reshape(B, T, n_head, D).transpose(0, 2, 1, 3)
    v = v.reshape(B, T, n_head, D).transpose(0, 2, 1, 3)
    att = (q @ jnp.swapaxes(k, -2, -1)) / math.sqrt(D)
    mask = jnp.tril(jnp.ones((T, T), bool))
    att = jnp.where(mask, att, -jnp.inf)
    att = jax.nn.softmax(att, axis=-1)
    y = (att @ v).transpose(0, 2, 1, 3).reshape(B, T, C)
    x = x + (y @ wproj + bproj)

    h2 = ln(x, ln2w, ln2b)
    fc = h2 @ wfc + bfc
    g = 0.5 * fc * (1.0 + jnp.tanh(math.sqrt(2.0 / math.pi)
                                   * (fc + 0.044715 * fc ** 3)))
    x = x + (g @ wproj2 + bproj2)
    return x


if __name__ == "__main__":
    # small GPT-like config
    B, T, C, n_head = 2, 8, 32, 4

    key = jax.random.PRNGKey(0)
    keys = jax.random.split(key, 8)

    x = jax.random.normal(keys[0], (B, T, C), jnp.float32)

    # deterministic synthetic parameters (Linear weights stored as (in, out))
    params = (
        jnp.ones((1, C), jnp.float32),                                     # ln1 weight
        jnp.zeros((1, C), jnp.float32),                                    # ln1 bias
        0.02 * jax.random.normal(keys[1], (C, 3 * C), jnp.float32),        # c_attn W
        0.01 * jax.random.normal(keys[2], (1, 3 * C), jnp.float32),        # c_attn b
        0.02 * jax.random.normal(keys[3], (C, C), jnp.float32),            # attn c_proj W
        0.01 * jax.random.normal(keys[4], (1, C), jnp.float32),            # attn c_proj b
        jnp.ones((1, C), jnp.float32),                                     # ln2 weight
        jnp.zeros((1, C), jnp.float32),                                    # ln2 bias
        0.02 * jax.random.normal(keys[5], (C, 4 * C), jnp.float32),        # c_fc W
        0.01 * jax.random.normal(keys[6], (1, 4 * C), jnp.float32),        # c_fc b
        0.02 * jax.random.normal(keys[7], (4 * C, C), jnp.float32),        # mlp c_proj W
        jnp.zeros((1, C), jnp.float32),                                    # mlp c_proj b
    )

    out = block_forward(x, params, n_head)
    out = jax.block_until_ready(out)

    ref = reference_block(x, params, n_head)
    assert out.shape == (B, T, C)
    max_err = float(jnp.max(jnp.abs(out - ref)))
    # bf16 MXU operands (f32 accumulation) + approx reciprocal vs f32 reference
    assert jnp.allclose(out, ref, rtol=2e-2, atol=2e-2), \
        f"mismatch vs reference (max abs err {max_err})"

    print("KERNEL_OK")
</pallas_src>

<mosaic_0001>
module attributes {stable_mosaic.version = 11 : i64} {
  func.func @kernel(%arg0: i32, %arg1: i32, %arg2: memref<1x8x32xf32, #tpu.memory_space<vmem>>, %arg3: memref<1x32xf32, #tpu.memory_space<vmem>>, %arg4: memref<1x32xf32, #tpu.memory_space<vmem>>, %arg5: memref<32x96xbf16, #tpu.memory_space<vmem>>, %arg6: memref<1x96xf32, #tpu.memory_space<vmem>>, %arg7: memref<1x4x8x8xbf16, #tpu.memory_space<vmem>>, %arg8: memref<1x4x8x8xbf16, #tpu.memory_space<vmem>>, %arg9: memref<1x4x8x8xbf16, #tpu.memory_space<vmem>>) attributes {dimension_semantics = [#tpu.dimension_semantics<parallel>, #tpu.dimension_semantics<parallel>], iteration_bounds = array<i64: 2, 1>, scalar_prefetch = 0 : i64, scratch_operands = 0 : i64, tpu.core_type = #tpu.core_type<tc>, window_params = [{transform_indices = @transform_0, window_bounds = array<i64: 1, 8, 32>}, {pipeline_mode = #tpu.pipeline_mode<synchronous>, transform_indices = @transform_1, window_bounds = array<i64: 1, 32>}, {pipeline_mode = #tpu.pipeline_mode<synchronous>, transform_indices = @transform_2, window_bounds = array<i64: 1, 32>}, {pipeline_mode = #tpu.pipeline_mode<synchronous>, transform_indices = @transform_3, window_bounds = array<i64: 32, 96>}, {pipeline_mode = #tpu.pipeline_mode<synchronous>, transform_indices = @transform_4, window_bounds = array<i64: 1, 96>}, {transform_indices = @transform_5, window_bounds = array<i64: 1, 4, 8, 8>}, {transform_indices = @transform_6, window_bounds = array<i64: 1, 4, 8, 8>}, {transform_indices = @transform_7, window_bounds = array<i64: 1, 4, 8, 8>}]} {
    %c0 = arith.constant 0 : index
    %c0_0 = arith.constant 0 : index
    %c0_1 = arith.constant 0 : index
    %0 = vector.load %arg2[%c0, %c0_0, %c0_1] : memref<1x8x32xf32, #tpu.memory_space<vmem>>, vector<1x8x32xf32>
    %1 = vector.shape_cast %0 : vector<1x8x32xf32> to vector<8x32xf32>
    %c0_2 = arith.constant 0 : index
    %c0_3 = arith.constant 0 : index
    %2 = vector.load %arg3[%c0_2, %c0_3] : memref<1x32xf32, #tpu.memory_space<vmem>>, vector<1x32xf32>
    %c0_4 = arith.constant 0 : index
    %c0_5 = arith.constant 0 : index
    %3 = vector.load %arg4[%c0_4, %c0_5] : memref<1x32xf32, #tpu.memory_space<vmem>>, vector<1x32xf32>
    %cst = arith.constant dense<0.000000e+00> : vector<8xf32>
    %4 = vector.multi_reduction <add>, %1, %cst [1] : vector<8x32xf32> to vector<8xf32>
    %5 = vector.shape_cast %4 : vector<8xf32> to vector<8x1xf32>
    %cst_6 = arith.constant 3.200000e+01 : f32
    %6 = vector.broadcast %cst_6 : f32 to vector<8x1xf32>
    %7 = arith.divf %5, %6 : vector<8x1xf32>
    %8 = vector.broadcast %7 : vector<8x1xf32> to vector<8x32xf32>
    %9 = arith.subf %1, %8 : vector<8x32xf32>
    %10 = arith.mulf %9, %9 : vector<8x32xf32>
    %cst_7 = arith.constant dense<0.000000e+00> : vector<8xf32>
    %11 = vector.multi_reduction <add>, %10, %cst_7 [1] : vector<8x32xf32> to vector<8xf32>
    %12 = vector.shape_cast %11 : vector<8xf32> to vector<8x1xf32>
    %cst_8 = arith.constant 3.200000e+01 : f32
    %13 = vector.broadcast %cst_8 : f32 to vector<8x1xf32>
    %14 = arith.divf %12, %13 : vector<8x1xf32>
    %15 = vector.broadcast %7 : vector<8x1xf32> to vector<8x32xf32>
    %16 = arith.subf %1, %15 : vector<8x32xf32>
    %cst_9 = arith.constant 9.99999974E-6 : f32
    %17 = vector.broadcast %cst_9 : f32 to vector<8x1xf32>
    %18 = arith.addf %14, %17 : vector<8x1xf32>
    %19 = math.rsqrt %18 : vector<8x1xf32>
    %20 = vector.broadcast %19 : vector<8x1xf32> to vector<8x32xf32>
    %21 = arith.mulf %16, %20 : vector<8x32xf32>
    %22 = vector.broadcast %2 : vector<1x32xf32> to vector<8x32xf32>
    %23 = arith.mulf %21, %22 : vector<8x32xf32>
    %24 = vector.broadcast %3 : vector<1x32xf32> to vector<8x32xf32>
    %25 = arith.addf %23, %24 : vector<8x32xf32>
    %26 = arith.truncf %25 : vector<8x32xf32> to vector<8x32xbf16>
    %c0_10 = arith.constant 0 : index
    %c0_11 = arith.constant 0 : index
    %27 = vector.load %arg5[%c0_10, %c0_11] : memref<32x96xbf16, #tpu.memory_space<vmem>>, vector<32x96xbf16>
    %cst_12 = arith.constant dense<0.000000e+00> : vector<8x96xf32>
    %28 = tpu.matmul %26, %27, %cst_12 {dimension_numbers = #tpu.dot_dimension_numbers<[1], [0], [0], [1], [0, 0, 1, 1], [], []>} : vector<8x32xbf16>, vector<32x96xbf16>, vector<8x96xf32> -> vector<8x96xf32>
    %c0_13 = arith.constant 0 : index
    %c0_14 = arith.constant 0 : index
    %29 = vector.load %arg6[%c0_13, %c0_14] : memref<1x96xf32, #tpu.memory_space<vmem>>, vector<1x96xf32>
    %30 = vector.broadcast %29 : vector<1x96xf32> to vector<8x96xf32>
    %31 = arith.addf %28, %30 : vector<8x96xf32>
    %32 = vector.extract_strided_slice %31 {offsets = [0, 0], sizes = [8, 8], strides = [1, 1]} : vector<8x96xf32> to vector<8x8xf32>
    %cst_15 = arith.constant 0.353553385 : f32
    %33 = vector.broadcast %cst_15 : f32 to vector<8x8xf32>
    %34 = arith.mulf %32, %33 : vector<8x8xf32>
    %35 = arith.truncf %34 : vector<8x8xf32> to vector<8x8xbf16>
    %c0_16 = arith.constant 0 : index
    %c0_17 = arith.constant 0 : index
    %c0_18 = arith.constant 0 : index
    %c0_19 = arith.constant 0 : index
    %36 = vector.load %arg7[%c0_16, %c0_17, %c0_18, %c0_19] : memref<1x4x8x8xbf16, #tpu.memory_space<vmem>>, vector<1x1x8x8xbf16>
    %37 = vector.shape_cast %36 : vector<1x1x8x8xbf16> to vector<8x8xbf16>
    %38 = vector.shape_cast %35 : vector<8x8xbf16> to vector<1x1x8x8xbf16>
    tpu.vector_store %arg7[%c0_16, %c0_17, %c0_18, %c0_19], %38 {strides = array<i32>} : memref<1x4x8x8xbf16, #tpu.memory_space<vmem>>, vector<1x1x8x8xbf16>,
    %39 = vector.extract_strided_slice %31 {offsets = [0, 32], sizes = [8, 8], strides = [1, 1]} : vector<8x96xf32> to vector<8x8xf32>
    %40 = arith.truncf %39 : vector<8x8xf32> to vector<8x8xbf16>
    %c0_20 = arith.constant 0 : index
    %c0_21 = arith.constant 0 : index
    %c0_22 = arith.constant 0 : index
    %c0_23 = arith.constant 0 : index
    %41 = vector.load %arg8[%c0_20, %c0_21, %c0_22, %c0_23] : memref<1x4x8x8xbf16, #tpu.memory_space<vmem>>, vector<1x1x8x8xbf16>
    %42 = vector.shape_cast %41 : vector<1x1x8x8xbf16> to vector<8x8xbf16>
    %43 = vector.shape_cast %40 : vector<8x8xbf16> to vector<1x1x8x8xbf16>
    tpu.vector_store %arg8[%c0_20, %c0_21, %c0_22, %c0_23], %43 {strides = array<i32>} : memref<1x4x8x8xbf16, #tpu.memory_space<vmem>>, vector<1x1x8x8xbf16>,
    %44 = vector.extract_strided_slice %31 {offsets = [0, 64], sizes = [8, 8], strides = [1, 1]} : vector<8x96xf32> to vector<8x8xf32>
    %45 = arith.truncf %44 : vector<8x8xf32> to vector<8x8xbf16>
    %c0_24 = arith.constant 0 : index
    %c0_25 = arith.constant 0 : index
    %c0_26 = arith.constant 0 : index
    %c0_27 = arith.constant 0 : index
    %46 = vector.load %arg9[%c0_24, %c0_25, %c0_26, %c0_27] : memref<1x4x8x8xbf16, #tpu.memory_space<vmem>>, vector<1x1x8x8xbf16>
    %47 = vector.shape_cast %46 : vector<1x1x8x8xbf16> to vector<8x8xbf16>
    %48 = vector.shape_cast %45 : vector<8x8xbf16> to vector<1x1x8x8xbf16>
    tpu.vector_store %arg9[%c0_24, %c0_25, %c0_26, %c0_27], %48 {strides = array<i32>} : memref<1x4x8x8xbf16, #tpu.memory_space<vmem>>, vector<1x1x8x8xbf16>,
    %49 = vector.extract_strided_slice %31 {offsets = [0, 8], sizes = [8, 8], strides = [1, 1]} : vector<8x96xf32> to vector<8x8xf32>
    %cst_28 = arith.constant 0.353553385 : f32
    %50 = vector.broadcast %cst_28 : f32 to vector<8x8xf32>
    %51 = arith.mulf %49, %50 : vector<8x8xf32>
    %52 = arith.truncf %51 : vector<8x8xf32> to vector<8x8xbf16>
    %c0_29 = arith.constant 0 : index
    %c1 = arith.constant 1 : index
    %c0_30 = arith.constant 0 : index
    %c0_31 = arith.constant 0 : index
    %53 = vector.load %arg7[%c0_29, %c1, %c0_30, %c0_31] : memref<1x4x8x8xbf16, #tpu.memory_space<vmem>>, vector<1x1x8x8xbf16>
    %54 = vector.shape_cast %53 : vector<1x1x8x8xbf16> to vector<8x8xbf16>
    %55 = vector.shape_cast %52 : vector<8x8xbf16> to vector<1x1x8x8xbf16>
    tpu.vector_store %arg7[%c0_29, %c1, %c0_30, %c0_31], %55 {strides = array<i32>} : memref<1x4x8x8xbf16, #tpu.memory_space<vmem>>, vector<1x1x8x8xbf16>,
    %56 = vector.extract_strided_slice %31 {offsets = [0, 40], sizes = [8, 8], strides = [1, 1]} : vector<8x96xf32> to vector<8x8xf32>
    %57 = arith.truncf %56 : vector<8x8xf32> to vector<8x8xbf16>
    %c0_32 = arith.constant 0 : index
    %c1_33 = arith.constant 1 : index
    %c0_34 = arith.constant 0 : index
    %c0_35 = arith.constant 0 : index
    %58 = vector.load %arg8[%c0_32, %c1_33, %c0_34, %c0_35] : memref<1x4x8x8xbf16, #tpu.memory_space<vmem>>, vector<1x1x8x8xbf16>
    %59 = vector.shape_cast %58 : vector<1x1x8x8xbf16> to vector<8x8xbf16>
    %60 = vector.shape_cast %57 : vector<8x8xbf16> to vector<1x1x8x8xbf16>
    tpu.vector_store %arg8[%c0_32, %c1_33, %c0_34, %c0_35], %60 {strides = array<i32>} : memref<1x4x8x8xbf16, #tpu.memory_space<vmem>>, vector<1x1x8x8xbf16>,
    %61 = vector.extract_strided_slice %31 {offsets = [0, 72], sizes = [8, 8], strides = [1, 1]} : vector<8x96xf32> to vector<8x8xf32>
    %62 = arith.truncf %61 : vector<8x8xf32> to vector<8x8xbf16>
    %c0_36 = arith.constant 0 : index
    %c1_37 = arith.constant 1 : index
    %c0_38 = arith.constant 0 : index
    %c0_39 = arith.constant 0 : index
    %63 = vector.load %arg9[%c0_36, %c1_37, %c0_38, %c0_39] : memref<1x4x8x8xbf16, #tpu.memory_space<vmem>>, vector<1x1x8x8xbf16>
    %64 = vector.shape_cast %63 : vector<1x1x8x8xbf16> to vector<8x8xbf16>
    %65 = vector.shape_cast %62 : vector<8x8xbf16> to vector<1x1x8x8xbf16>
    tpu.vector_store %arg9[%c0_36, %c1_37, %c0_38, %c0_39], %65 {strides = array<i32>} : memref<1x4x8x8xbf16, #tpu.memory_space<vmem>>, vector<1x1x8x8xbf16>,
    %66 = vector.extract_strided_slice %31 {offsets = [0, 16], sizes = [8, 8], strides = [1, 1]} : vector<8x96xf32> to vector<8x8xf32>
    %cst_40 = arith.constant 0.353553385 : f32
    %67 = vector.broadcast %cst_40 : f32 to vector<8x8xf32>
    %68 = arith.mulf %66, %67 : vector<8x8xf32>
    %69 = arith.truncf %68 : vector<8x8xf32> to vector<8x8xbf16>
    %c0_41 = arith.constant 0 : index
    %c2 = arith.constant 2 : index
    %c0_42 = arith.constant 0 : index
    %c0_43 = arith.constant 0 : index
    %70 = vector.load %arg7[%c0_41, %c2, %c0_42, %c0_43] : memref<1x4x8x8xbf16, #tpu.memory_space<vmem>>, vector<1x1x8x8xbf16>
    %71 = vector.shape_cast %70 : vector<1x1x8x8xbf16> to vector<8x8xbf16>
    %72 = vector.shape_cast %69 : vector<8x8xbf16> to vector<1x1x8x8xbf16>
    tpu.vector_store %arg7[%c0_41, %c2, %c0_42, %c0_43], %72 {strides = array<i32>} : memref<1x4x8x8xbf16, #tpu.memory_space<vmem>>, vector<1x1x8x8xbf16>,
    %73 = vector.extract_strided_slice %31 {offsets = [0, 48], sizes = [8, 8], strides = [1, 1]} : vector<8x96xf32> to vector<8x8xf32>
    %74 = arith.truncf %73 : vector<8x8xf32> to vector<8x8xbf16>
    %c0_44 = arith.constant 0 : index
    %c2_45 = arith.constant 2 : index
    %c0_46 = arith.constant 0 : index
    %c0_47 = arith.constant 0 : index
    %75 = vector.load %arg8[%c0_44, %c2_45, %c0_46, %c0_47] : memref<1x4x8x8xbf16, #tpu.memory_space<vmem>>, vector<1x1x8x8xbf16>
    %76 = vector.shape_cast %75 : vector<1x1x8x8xbf16> to vector<8x8xbf16>
    %77 = vector.shape_cast %74 : vector<8x8xbf16> to vector<1x1x8x8xbf16>
    tpu.vector_store %arg8[%c0_44, %c2_45, %c0_46, %c0_47], %77 {strides = array<i32>} : memref<1x4x8x8xbf16, #tpu.memory_space<vmem>>, vector<1x1x8x8xbf16>,
    %78 = vector.extract_strided_slice %31 {offsets = [0, 80], sizes = [8, 8], strides = [1, 1]} : vector<8x96xf32> to vector<8x8xf32>
    %79 = arith.truncf %78 : vector<8x8xf32> to vector<8x8xbf16>
    %c0_48 = arith.constant 0 : index
    %c2_49 = arith.constant 2 : index
    %c0_50 = arith.constant 0 : index
    %c0_51 = arith.constant 0 : index
    %80 = vector.load %arg9[%c0_48, %c2_49, %c0_50, %c0_51] : memref<1x4x8x8xbf16, #tpu.memory_space<vmem>>, vector<1x1x8x8xbf16>
    %81 = vector.shape_cast %80 : vector<1x1x8x8xbf16> to vector<8x8xbf16>
    %82 = vector.shape_cast %79 : vector<8x8xbf16> to vector<1x1x8x8xbf16>
    tpu.vector_store %arg9[%c0_48, %c2_49, %c0_50, %c0_51], %82 {strides = array<i32>} : memref<1x4x8x8xbf16, #tpu.memory_space<vmem>>, vector<1x1x8x8xbf16>,
    %83 = vector.extract_strided_slice %31 {offsets = [0, 24], sizes = [8, 8], strides = [1, 1]} : vector<8x96xf32> to vector<8x8xf32>
    %cst_52 = arith.constant 0.353553385 : f32
    %84 = vector.broadcast %cst_52 : f32 to vector<8x8xf32>
    %85 = arith.mulf %83, %84 : vector<8x8xf32>
    %86 = arith.truncf %85 : vector<8x8xf32> to vector<8x8xbf16>
    %c0_53 = arith.constant 0 : index
    %c3 = arith.constant 3 : index
    %c0_54 = arith.constant 0 : index
    %c0_55 = arith.constant 0 : index
    %87 = vector.load %arg7[%c0_53, %c3, %c0_54, %c0_55] : memref<1x4x8x8xbf16, #tpu.memory_space<vmem>>, vector<1x1x8x8xbf16>
    %88 = vector.shape_cast %87 : vector<1x1x8x8xbf16> to vector<8x8xbf16>
    %89 = vector.shape_cast %86 : vector<8x8xbf16> to vector<1x1x8x8xbf16>
    tpu.vector_store %arg7[%c0_53, %c3, %c0_54, %c0_55], %89 {strides = array<i32>} : memref<1x4x8x8xbf16, #tpu.memory_space<vmem>>, vector<1x1x8x8xbf16>,
    %90 = vector.extract_strided_slice %31 {offsets = [0, 56], sizes = [8, 8], strides = [1, 1]} : vector<8x96xf32> to vector<8x8xf32>
    %91 = arith.truncf %90 : vector<8x8xf32> to vector<8x8xbf16>
    %c0_56 = arith.constant 0 : index
    %c3_57 = arith.constant 3 : index
    %c0_58 = arith.constant 0 : index
    %c0_59 = arith.constant 0 : index
    %92 = vector.load %arg8[%c0_56, %c3_57, %c0_58, %c0_59] : memref<1x4x8x8xbf16, #tpu.memory_space<vmem>>, vector<1x1x8x8xbf16>
    %93 = vector.shape_cast %92 : vector<1x1x8x8xbf16> to vector<8x8xbf16>
    %94 = vector.shape_cast %91 : vector<8x8xbf16> to vector<1x1x8x8xbf16>
    tpu.vector_store %arg8[%c0_56, %c3_57, %c0_58, %c0_59], %94 {strides = array<i32>} : memref<1x4x8x8xbf16, #tpu.memory_space<vmem>>, vector<1x1x8x8xbf16>,
    %95 = vector.extract_strided_slice %31 {offsets = [0, 88], sizes = [8, 8], strides = [1, 1]} : vector<8x96xf32> to vector<8x8xf32>
    %96 = arith.truncf %95 : vector<8x8xf32> to vector<8x8xbf16>
    %c0_60 = arith.constant 0 : index
    %c3_61 = arith.constant 3 : index
    %c0_62 = arith.constant 0 : index
    %c0_63 = arith.constant 0 : index
    %97 = vector.load %arg9[%c0_60, %c3_61, %c0_62, %c0_63] : memref<1x4x8x8xbf16, #tpu.memory_space<vmem>>, vector<1x1x8x8xbf16>
    %98 = vector.shape_cast %97 : vector<1x1x8x8xbf16> to vector<8x8xbf16>
    %99 = vector.shape_cast %96 : vector<8x8xbf16> to vector<1x1x8x8xbf16>
    tpu.vector_store %arg9[%c0_60, %c3_61, %c0_62, %c0_63], %99 {strides = array<i32>} : memref<1x4x8x8xbf16, #tpu.memory_space<vmem>>, vector<1x1x8x8xbf16>,
    return
  }
  func.func @transform_0(%arg0: i32, %arg1: i32) -> (i32, i32, i32) {
    %c0_i32 = arith.constant 0 : i32
    %c0_i32_0 = arith.constant 0 : i32
    return %arg0, %arg1, %c0_i32 : i32, i32, i32
  }
  func.func @transform_1(%arg0: i32, %arg1: i32) -> (i32, i32) {
    %c0_i32 = arith.constant 0 : i32
    %c0_i32_0 = arith.constant 0 : i32
    %c0_i32_1 = arith.constant 0 : i32
    return %c0_i32, %c0_i32_0 : i32, i32
  }
  func.func @transform_2(%arg0: i32, %arg1: i32) -> (i32, i32) {
    %c0_i32 = arith.constant 0 : i32
    %c0_i32_0 = arith.constant 0 : i32
    %c0_i32_1 = arith.constant 0 : i32
    return %c0_i32, %c0_i32_0 : i32, i32
  }
  func.func @transform_3(%arg0: i32, %arg1: i32) -> (i32, i32) {
    %c0_i32 = arith.constant 0 : i32
    %c0_i32_0 = arith.constant 0 : i32
    %c0_i32_1 = arith.constant 0 : i32
    return %c0_i32, %c0_i32_0 : i32, i32
  }
  func.func @transform_4(%arg0: i32, %arg1: i32) -> (i32, i32) {
    %c0_i32 = arith.constant 0 : i32
    %c0_i32_0 = arith.constant 0 : i32
    %c0_i32_1 = arith.constant 0 : i32
    return %c0_i32, %c0_i32_0 : i32, i32
  }
  func.func @transform_5(%arg0: i32, %arg1: i32) -> (i32, i32, i32, i32) {
    %c0_i32 = arith.constant 0 : i32
    %c0_i32_0 = arith.constant 0 : i32
    %c0_i32_1 = arith.constant 0 : i32
    return %arg0, %c0_i32, %arg1, %c0_i32_0 : i32, i32, i32, i32
  }
  func.func @transform_6(%arg0: i32, %arg1: i32) -> (i32, i32, i32, i32) {
    %c0_i32 = arith.constant 0 : i32
    %c0_i32_0 = arith.constant 0 : i32
    %c0_i32_1 = arith.constant 0 : i32
    return %arg0, %c0_i32, %arg1, %c0_i32_0 : i32, i32, i32, i32
  }
  func.func @transform_7(%arg0: i32, %arg1: i32) -> (i32, i32, i32, i32) {
    %c0_i32 = arith.constant 0 : i32
    %c0_i32_0 = arith.constant 0 : i32
    %c0_i32_1 = arith.constant 0 : i32
    return %arg0, %c0_i32, %arg1, %c0_i32_0 : i32, i32, i32, i32
  }
}

</mosaic_0001>

<bundles_post_ra>
// kernel: tpu_custom_call.1
= control target key start
LH: loop header
LB: loop body
LE: loop exit
PB: predicated region body
PF: predicated region fallthrough
CT: control target
= control target key end

     0   :  { %s1446_s0 = inlined_call_operand.hbm [shape: f32[2,8,32], index: 0, kind: input, shape index: {}]   ;;  %s1447_s1 = inlined_call_operand.vmem [shape: f32[1,32], index: 1, kind: input, shape index: {}]   ;;  %s1448_s2 = inlined_call_operand.vmem [shape: f32[1,32], index: 2, kind: input, shape index: {}]   ;;  %s1449_s3 = inlined_call_operand.hbm [shape: bf16[32,96], index: 3, kind: input, shape index: {}]   ;;  %s1450_s4 = inlined_call_operand.vmem [shape: f32[1,96], index: 4, kind: input, shape index: {}]   ;;  %s1451_s5 = inlined_call_operand.hbm [shape: bf16[2,4,8,8], index: 5, kind: output, shape index: {0}]   ;;  %s1452_s6 = inlined_call_operand.hbm [shape: bf16[2,4,8,8], index: 6, kind: output, shape index: {1}]   ;;  %s1453_s7 = inlined_call_operand.hbm [shape: bf16[2,4,8,8], index: 7, kind: output, shape index: {2}]  }
   0x1   :  { %1459 = sst [smem:[#allocation18_spill]] %s1449_s3 }
   0x2   :  { %13 = vsyncpa [#allocation3], 0 }
   0x3   :  { %15 = vsyncpa [#allocation3 + $0x1], 0 }
   0x4   :  { %16 = vsyncpa [#allocation6], 0 }
   0x5   :  { %17 = vsyncpa [#allocation4], 0 }
   0x6   :  { %19 = vsyncpa [#allocation4 + $0x1], 0 }
   0x7   :  { %20 = vsyncpa [#allocation9], 0 }
   0x8   :  { %22 = vsyncpa [#allocation9 + $0x1], 0  ;;  %s1147_s24 = smov 0   ;;  %s1149_s25 = smov 0  }
   0x9   :  { %s1151_s26 = smov 0   ;;  %s1153_s27 = smov 0  }
   0xa   :  { %s1155_s28 = smov 0   ;;  %s1157_s29 = smov 0  }
   0xb LB: > { %1460 = sst [smem:[#allocation15_spill]] %s1080_s28  ;;  %s1178_s30 = sadd.s32 4294967295, %s1084_s29   ;;  %s1084_s29 = sphi %s1157_s29, %s28_s29   ;;  %s1080_s28 = sphi %s1155_s28, %s1479_s28   ;;  %s1076_s27 = sphi %s1153_s27, %s1478_s27   ;;  %s1072_s26 = sphi %s1151_s26, %s1482_s26   ;;  %s1068_s25 = sphi %s1149_s25, %s1481_s25   ;;  %s1064_s24 = sphi %s1147_s24, %s1480_s24  }
   0xc   : > { %s1454_s8 = sadd.s32 4294967294, %s1084_s29   ;;  %p62_p0 = scmp.ne.s32.totalorder %s1068_s25, %s1064_s24 }
   0xd   : > { %p1458_p1 = scmp.eq.s32.totalorder %s1178_s30, 0  ;;  %p178_p3 = scmp.eq.s32.totalorder %s1454_s8, 1 }
   0xe   : > { %p732_p5 = scmp.ge.s32.totalorder %s1084_s29, 1  ;;  %p241_p7 = scmp.lt.s32.totalorder %s1084_s29, 3 }
   0xf   : > { %p1189_p4 = por %p1458_p1, %p62_p0  ;;  %p1194_p6 = por %p178_p3, %p62_p0 }
  0x10   : > { %p1199_p8 = pnand %p732_p5, %p241_p7  ;;  %s1086_s12 = smov [#allocation5]  }
  0x11   : > { %s1462_s10 = scalar_select %p1194_p6, 1, 0 }
  0x12   : > { %s259_s13 = sshll.u32 %s1086_s12, 4  ;;  %p799_p9 = pneg %p1199_p8  ;;  %s260_s13 = int_to_ptr.vmem [resolvable:$true] %s259_s13 }
  0x13   : > { %1463 = sst [smem:[#allocation16_spill]] %s1462_s10  ;;  %s40_s15 = sadd.s32 1, %s1080_s28 }
  0x14   : > { %p1208_p11 = pnand %p799_p9, %p1458_p1  ;;  %s901_s16 = scalar_lea.vmem %s260_s13, 256 }
  0x15   : > { %p902_p13 = scmp.ne.s32.totalorder %s260_s13, %s901_s16  ;;  %p909_p5 = scmp.lt.s32.totalorder %s260_s13, %s260_s13 }
  0x16   : > { %p892_p12 = pneg %p1208_p11  ;;  %p910_p7 = scmp.lt.s32.totalorder %s901_s16, %s901_s16 }
  0x18   : > { %p904_p0 = pnand %p902_p13, %p892_p12  ;;  %p911_p2 = por %p910_p7, %p909_p5 }
  0x1a   : > { %p905_p3 = pneg %p904_p0 }
  0x1c   : > { %p912_p6 = pnand %p911_p2, %p905_p3 }
  0x1e   : > { %915 = shalt.err (!%p912_p6)
}
  0x1f   : > { %s1087_s17 = smov 64   ;;  %s1088_s18 = smov 4  }
  0x20   : > { %s1466_s3 = sld [smem:[#allocation18_spill]]  ;;  %p42_p2 = scmp.ge.s32.totalorder %s40_s15, 2 }
  0x21   : > { %s49_s21 = sadd.s32 1, %s1072_s26  ;;  %p56_p6 = scmp.ne.s32.totalorder %s1072_s26, %s1068_s25 }
  0x22   : > { %p57_p9 = scmp.eq.s32.totalorder %s1084_s29, 0  ;;  %s1484_s15 = smov (%p42_p2, %s40_s15), 0 }
  0x23   : > { %1467 = sst [smem:[#allocation17_spill]] %s1484_s15  ;;  %p1469_p13 = scmp.eq.s32.totalorder %s1178_s30, 1 }
  0x24   : > { %p1226_p12 = por %p57_p9, %p56_p6  ;;  %s44_s12 = ssub.s32 %s1080_s28, %s1484_s15 }
  0x25   : > { %p1232_p0 = por %p1469_p13, %p56_p6  ;;  %p818_p3 = scmp.lt.s32.totalorder %s1084_s29, 2 }
  0x26   : > { %802 = dma.hbm_to_vmem [thread:$0]  (!%p1208_p11), %s1466_s3, 256, %s260_s13, [#allocation6], %s1087_s17, %s1087_s17, %s1088_s18  }
  0x27   : > { %p47_p11 = scmp.eq.s32.totalorder %s44_s12, 0  ;;  %s276_s13 = sand.u32 1, %s1072_s26  }
  0x28   : > { %s735_s14 = sshll.u32 %s276_s13, 3  ;;  %s736_s17 = sshll.u32 %s1080_s28, 7 }
  0x29   : > { %s1241_s16 = scalar_select %p47_p11, %s1072_s26, %s49_s21  }
  0x2a   : > { %s286_s20 = scalar_lea.hbm %s1446_s0, %s736_s17  ;;  %s280_s8 = scalar_lea.vmem [#allocation2], %s735_s14 }
  0x2b   : > { %s288_s3 = sshll.u32 %s280_s8, 4  ;;  %p1249_p5 = pnand %p818_p3, %p1226_p12  ;;  %s289_s3 = int_to_ptr.vmem [resolvable:$true] %s288_s3 }
  0x2c   : > { %s277_s15 = scalar_lea.sflag [#allocation3], %s276_s13  ;;  %s929_s12 = scalar_lea.vmem %s289_s3, 128 }
  0x2d   : > { %p918_p7 = pneg %p1249_p5  ;;  %p930_p2 = scmp.ne.s32.totalorder %s289_s3, %s929_s12 }
  0x2e   : > { %s1089_s21 = smov [#allocation2]  }
  0x2f   : > { %p932_p6 = pnand %p930_p2, %p918_p7  ;;  %s934_s28 = sshll.u32 %s1089_s21, 4  ;;  %s935_s28 = int_to_ptr.vmem [resolvable:$false] %s934_s28 }
  0x30   : > { %s936_s17 = scalar_lea.vmem %s935_s28, 256  ;;  %p937_p13 = scmp.lt.s32.totalorder %s289_s3, %s935_s28 }
  0x31   : > { %p933_p9 = pneg %p932_p6  ;;  %p938_p11 = scmp.lt.s32.totalorder %s936_s17, %s929_s12 }
  0x33   : > { %p939_p10 = por %p938_p11, %p937_p13 }
  0x35   : > { %p940_p1 = pnand %p939_p10, %p933_p9 }
  0x37   : > { %943 = shalt.err (!%p940_p1)
}
  0x38   : > { %806 = dma.hbm_to_vmem [thread:$0]  (!%p1249_p5), %s286_s20, 128, %s289_s3, %s277_s15  }
  0x39   : > { %297 = sbr.rel (%p1199_p8) target bundleno = 761 (0x2f9), region = 40  ;;  %s1260_s8 = sand.u32 (!%p1199_p8), 1, %s1068_s25  }
  0x3a   : > { %s738_s22 = sshll.u32 (!%p1199_p8), %s1260_s8, 3  ;;  %s300_s13 = scalar_lea.sflag (!%p1199_p8), [#allocation3], %s1260_s8 }
  0x3b   : > { %s303_s14 = scalar_lea.vmem (!%p1199_p8), [#allocation2], %s738_s22 }
  0x3e   : > { %1047 = dma.done.wait (%p1189_p4), %s300_s13, 128  }
  0x3f   : > { %1049 = vsyncadd (%p1189_p4), %s300_s13, 4294967168  ;;  %p1472_p1 = scmp.eq.s32.totalorder %s1178_s30, 0 }
  0x41   : > { %1051 = dma.done.wait (%p1472_p1), [#allocation6], 256   ;;  %p1473_p10 = pmov %p1472_p1 }
  0x42   : > { %vm352_vm0 = vcmask 261120   ;;  %v349_v0 = vld [vmem:[%s303_s14] sm:$0xff]  ;;  %v886_v7 = vld [vmem:[#allocation5 + $0x8] sm:$0xff]   ;;  %v1090_v8 = vmov 0.0   ;;  %vm1091_vm1 = vmmov 0   ;;  %v887_v9 = vld [vmem:[#allocation5] sm:$0xff]  }
  0x43   : > { %1053 = vsyncadd (%p1473_p10), [#allocation6], 4294967040  ;;  %v353_v1 = vsel %vm352_vm0, %v349_v0, 0.0  ;;  %779 = vmatprep.subr.bf16.mxu0 %v1090_v8  ;;  %783 = vmatprep.mubr.msk.bf16.mxu0 %vm1091_vm1, %v1090_v8  ;;  %v743_v14 = vld [vmem:[%s1447_s1] ss:$0 sm:$0xff]  ;;  %s1285_s18 = sshll.u32 %s1260_s8, 4 }
  0x44   : > { %354 = vadd.xlane.f32.xlu0 %v353_v1  ;;  %780 = vmatpush3.bf16.msra.mxu0 %v886_v7  ;;  %v744_v16 = vld [vmem:[%s1448_s2] ss:$0 sm:$0xff]  ;;  %vm450_vm2 = vcmask 60416   ;;  %s1092_s19 = smov 80   ;;  %s1093_s20 = smov 96  }
  0x45   : > { %781 = vmatprep.subr.bf16.mxu0 %v1090_v8  ;;  %v745_v20 = vld [vmem:[%s1450_s4] ss:$0 sm:$0xff]  ;;  %s1288_s12 = scalar_lea.vmem [#allocation7], %s1285_s18  ;;  %s1094_s21 = smov 88  }
  0x46   : > { %s1095_s17 = smov 104   ;;  %s1096_s22 = smov 72  }
  0x47   : > { %s1097_s13 = smov 64   ;;  %s1098_s14 = smov 56  }
  0x48   : > { %782 = vmatpush3.bf16.msra.mxu0 %v887_v9  ;;  %s1099_s3 = smov 48   ;;  %s1100_s28 = smov 120  }
  0x49   : > { %s1101_s9 = smov 112   ;;  %s1102_s10 = smov 40  }
  0x4a   : > { %s340_s11 = scalar_lea.vmem [#allocation8], %s1285_s18 }
  0x4b   : > { %s554_s15 = sshll.u32 %s340_s11, 4  ;;  %s1303_s15 = int_to_ptr.vmem [resolvable:$true] %s554_s15 }
  0xcd   : > { %v355_v2 = vpop.xlane.xlu0 %354 }
  0xce   : > { %v357_v3 = vmul.f32 0.03125, %v355_v2 }
  0xd0   : > { %v358_v4 = vsub.f32 %v349_v0, %v357_v3 }
  0xd2   : > { %v359_v5 = vmul.f32 %v358_v4, %v358_v4 }
  0xd4   : > { %v360_v6 = vsel %vm352_vm0, %v359_v5, 0.0 }
  0xd5   : > { %361 = vadd.xlane.f32.xlu0 %v360_v6 }
 0x15e   : > { %v362_v10 = vpop.xlane.xlu0 %361 }
 0x15f   : > { %v363_v11 = vmul.f32 0.03125, %v362_v10 }
 0x161   : > { %v364_v12 = vadd.f32 1e-05, %v363_v11 }
 0x163   : > { %888 = vrsqrt.f32 %v364_v12 }
 0x170   : > { %v889_v13 = vpop.eup %888 }
 0x171   : > { %v366_v15 = vmul.f32 %v889_v13, %v358_v4 }
 0x173   : > { %v373_v17 = vmul.f32 %v743_v14, %v366_v15 }
 0x175   : > { %v380_v18 = vadd.f32 %v744_v16, %v373_v17 }
 0x177   : > { %v381_v19 = vpack.c.bf16 %v380_v18, %v380_v18 }
 0x179   : > { %784 = vmatmul.mubr.msk.bf16.vlgmr.msra.gmra.mxu0 %vm352_vm0, %v381_v19 }
 0x239   : > { %v442_v21 = vpop.f32.mrf.mxu0 }
 0x23a   : > { %v443_v22 = vadd.f32 %v745_v20, %v442_v21 }
 0x23b   : > { %v785_v23 = vpop.f32.mrf.mxu0 }
 0x23c   : > { %v448_v24 = vmul.f32 0.35355338, %v443_v22  ;;  %v771_v25 = vpack.c.bf16 %v443_v22, %v443_v22 }
 0x23d   : > { %v445_v26 = vpop.f32.mrf.mxu0 }
 0x23e   : > { %v449_v27 = vpack.c.bf16 %v448_v24, %v448_v24  ;;  %487 = vrot.lane.b32.xlu0 %v771_v25, %s1092_s19  ;;  %456 = vrot.lane.b32.xlu1 %v771_v25, %s1093_s20  ;;  %s517_s19 = sand.u32 1, %s1178_s30   ;;  %s1298_s20 = sshll.u32 %s1076_s27, 8 }
 0x23f   : > { %v786_v28 = vpop.f32.mrf.mxu0  ;;  %s1312_s27 = scalar_lea.sflag [#allocation9], %s517_s19  ;;  %s944_s30 = scalar_lea.vmem %s1303_s15, 256 }
 0x240   : > { %451 = vst.msk [vmem:[%s1288_s12] sm:$0xf] %vm450_vm2, %v449_v27  ;;  %p945_p4 = scmp.ne.s32.totalorder %s1303_s15, %s944_s30 }
 0x242   : > { %472 = vrot.lane.b32.xlu1 %v771_v25, %s1094_s21  ;;  %497 = vrot.lane.b32.xlu0 %v449_v27, %s1095_s17  ;;  %p946_p8 = pnand %p945_p4, %p1232_p0 }
 0x244   : > { %p947_p12 = pneg %p946_p8 }
 0x246   : > { %502 = vrot.lane.b32.xlu1 %v771_v25, %s1096_s22  ;;  %s1309_s22 = scalar_lea.hbm %s1452_s6, %s1298_s20 }
 0x24a   : > { %460 = vrot.lane.b32.xlu1 %v771_v25, %s1097_s13 }
 0x24e   : > { %477 = vrot.lane.b32.xlu1 %v771_v25, %s1098_s14  ;;  %s1103_s14 = smov [#allocation8]  }
 0x252   : > { %492 = vrot.lane.b32.xlu1 %v771_v25, %s1099_s3  ;;  %s948_s3 = sshll.u32 %s1103_s14, 4  ;;  %s949_s3 = int_to_ptr.vmem [resolvable:$false] %s948_s3 }
 0x253   : > { %p951_p3 = scmp.lt.s32.totalorder %s1303_s15, %s949_s3 }
 0x256   : > { %467 = vrot.lane.b32.xlu1 %v449_v27, %s1100_s28  ;;  %s950_s28 = scalar_lea.vmem %s949_s3, 512 }
 0x257   : > { %p952_p5 = scmp.lt.s32.totalorder %s950_s28, %s944_s30 }
 0x259   : > { %p953_p7 = por %p952_p5, %p951_p3 }
 0x25a   : > { %482 = vrot.lane.b32.xlu1 %v449_v27, %s1101_s9 }
 0x25b   : > { %p954_p2 = pnand %p953_p7, %p947_p12 }
 0x25e   : > { %507 = vrot.lane.b32.xlu1 %v771_v25, %s1102_s10 }
 0x2b0   : > { %v488_v29 = vpop.permute.xlu0 %487  ;;  %v457_v30 = vpop.permute.xlu1 %456 }
 0x2b1   : > { %755 = vst.msk [vmem:[%s340_s11 + $0x8] sm:$0xf] %vm450_vm2, %v488_v29  ;;  %459 = vst.msk [vmem:[%s340_s11] sm:$0xf] %vm450_vm2, %v457_v30 }
 0x2b4   : > { %v473_v31 = vpop.permute.xlu1 %472  ;;  %v498_v32 = vpop.permute.xlu0 %497 }
 0x2b5   : > { %752 = vst.msk [vmem:[%s340_s11 + $0x4] sm:$0xf] %vm450_vm2, %v473_v31  ;;  %757 = vst.msk [vmem:[%s1288_s12 + $0xc] sm:$0xf] %vm450_vm2, %v498_v32 }
 0x2b8   : > { %v503_v33 = vpop.permute.xlu1 %502 }
 0x2b9   : > { %758 = vst.msk [vmem:[%s340_s11 + $0xc] sm:$0xf] %vm450_vm2, %v503_v33 }
 0x2ba   : > { %957 = shalt.err (!%p954_p2)
}
 0x2bb   : > { %s958_s9 = scalar_lea.hbm %s1309_s22, 256  ;;  %s962_s19 = scalar_lea.hbm %s1452_s6, 512 }
 0x2bc   : > { %p959_p6 = scmp.ne.s32.totalorder %s1309_s22, %s958_s9  ;;  %p963_p11 = scmp.lt.s32.totalorder %s1309_s22, %s1452_s6 }
 0x2bd   : > { %p964_p1 = scmp.lt.s32.totalorder %s962_s19, %s958_s9 }
 0x2be   : > { %p960_p9 = pnand %p959_p6, %p1232_p0 }
 0x2bf   : > { %p965_p10 = por %p964_p1, %p963_p11 }
 0x2c0   : > { %p961_p13 = pneg %p960_p9 }
 0x2c2   : > { %p966_p4 = pnand %p965_p10, %p961_p13 }
 0x2c4   : > { %969 = shalt.err (!%p966_p4)
}
 0x2c5   : > { %s1104_s30 = smov 4   ;;  %v461_v34 = vpop.permute.xlu1 %460  ;;  %s1339_s14 = scalar_lea.vmem [#allocation10], %s1285_s18 }
 0x2c6   : > { %794 = dma.vmem_to_hbm [thread:$0]  (%p1232_p0), %s1303_s15, 256, %s1309_s22, %s1312_s27, %s1097_s13, %s1097_s13, %s1104_s30  }
 0x2c7   : > { %463 = vst.msk [vmem:[%s1339_s14] sm:$0xf] %vm450_vm2, %v461_v34  ;;  %s537_s3 = sshll.u32 %s1288_s12, 4  ;;  %s1356_s22 = scalar_lea.hbm %s1451_s5, %s1298_s20  ;;  %s1350_s3 = int_to_ptr.vmem [resolvable:$true] %s537_s3 }
 0x2c8   : > { %s571_s28 = sshll.u32 %s1339_s14, 4  ;;  %s513_s9 = scalar_lea.sflag [#allocation4], %s1260_s8  ;;  %s1387_s28 = int_to_ptr.vmem [resolvable:$true] %s571_s28 }
 0x2c9   : > { %v478_v35 = vpop.permute.xlu1 %477  ;;  %s970_s10 = scalar_lea.vmem %s1350_s3, 256  ;;  %s1105_s11 = smov [#allocation7]  }
 0x2ca   : > { %753 = vst.msk [vmem:[%s1339_s14 + $0x4] sm:$0xf] %vm450_vm2, %v478_v35  ;;  %p971_p8 = scmp.ne.s32.totalorder %s1350_s3, %s970_s10  ;;  %s974_s19 = sshll.u32 %s1105_s11, 4  ;;  %s975_s19 = int_to_ptr.vmem [resolvable:$false] %s974_s19 }
 0x2cb   : > { %s976_s21 = scalar_lea.vmem %s975_s19, 512  ;;  %p977_p5 = scmp.lt.s32.totalorder %s1350_s3, %s975_s19 }
 0x2cc   : > { %p972_p12 = pnand %p971_p8, %p1232_p0  ;;  %p978_p7 = scmp.lt.s32.totalorder %s976_s21, %s970_s10 }
 0x2cd   : > { %v493_v36 = vpop.permute.xlu1 %492 }
 0x2ce   : > { %756 = vst.msk [vmem:[%s1339_s14 + $0x8] sm:$0xf] %vm450_vm2, %v493_v36  ;;  %p973_p3 = pneg %p972_p12  ;;  %p979_p2 = por %p978_p7, %p977_p5 }
 0x2d0   : > { %p980_p6 = pnand %p979_p2, %p973_p3 }
 0x2d1   : > { %v468_v37 = vpop.permute.xlu1 %467 }
 0x2d2   : > { %751 = vst.msk [vmem:[%s1288_s12 + $0x4] sm:$0xf] %vm450_vm2, %v468_v37 }
 0x2d5   : > { %v483_v38 = vpop.permute.xlu1 %482 }
 0x2d6   : > { %754 = vst.msk [vmem:[%s1288_s12 + $0x8] sm:$0xf] %vm450_vm2, %v483_v38 }
 0x2d7   : > { %983 = shalt.err (!%p980_p6)
}
 0x2d8   : > { %s984_s12 = scalar_lea.hbm %s1356_s22, 256  ;;  %s988_s18 = scalar_lea.hbm %s1451_s5, 512 }
 0x2d9   : > { %p985_p9 = scmp.ne.s32.totalorder %s1356_s22, %s984_s12  ;;  %p989_p1 = scmp.lt.s32.totalorder %s1356_s22, %s1451_s5 }
 0x2da   : > { %p990_p10 = scmp.lt.s32.totalorder %s988_s18, %s984_s12 }
 0x2db   : > { %p986_p13 = pnand %p985_p9, %p1232_p0 }
 0x2dc   : > { %p991_p4 = por %p990_p10, %p989_p1 }
 0x2dd   : > { %p987_p11 = pneg %p986_p13 }
 0x2df   : > { %p992_p8 = pnand %p991_p4, %p987_p11 }
 0x2e1   : > { %995 = shalt.err (!%p992_p8)
}
 0x2e2   : > { %793 = dma.vmem_to_hbm [thread:$0]  (%p1232_p0), %s1350_s3, 256, %s1356_s22, %s513_s9, %s1097_s13, %s1097_s13, %s1104_s30   ;;  %v508_v39 = vpop.permute.xlu1 %507 }
 0x2e3   : > { %s1393_s21 = scalar_lea.hbm %s1453_s7, %s1298_s20  ;;  %759 = vst.msk [vmem:[%s1339_s14 + $0xc] sm:$0xf] %vm450_vm2, %v508_v39  ;;  %s996_s12 = scalar_lea.vmem %s1387_s28, 256 }
 0x2e4   : > { %p997_p12 = scmp.ne.s32.totalorder %s1387_s28, %s996_s12  ;;  %s1106_s3 = smov [#allocation10]  }
 0x2e5   : > { %s1000_s22 = sshll.u32 %s1106_s3, 4  ;;  %s1001_s22 = int_to_ptr.vmem [resolvable:$false] %s1000_s22 }
 0x2e6   : > { %p998_p3 = pnand %p997_p12, %p1232_p0  ;;  %s1002_s9 = scalar_lea.vmem %s1001_s22, 512 }
 0x2e7   : > { %p1003_p7 = scmp.lt.s32.totalorder %s1387_s28, %s1001_s22  ;;  %p1004_p2 = scmp.lt.s32.totalorder %s1002_s9, %s996_s12 }
 0x2e8   : > { %p999_p5 = pneg %p998_p3 }
 0x2e9   : > { %p1005_p6 = por %p1004_p2, %p1003_p7 }
 0x2eb   : > { %p1006_p9 = pnand %p1005_p6, %p999_p5 }
 0x2ed   : > { %1009 = shalt.err (!%p1006_p9)
}
 0x2ee   : > { %s1010_s20 = scalar_lea.hbm %s1393_s21, 256  ;;  %s1014_s17 = scalar_lea.hbm %s1453_s7, 512 }
 0x2ef   : > { %p1011_p13 = scmp.ne.s32.totalorder %s1393_s21, %s1010_s20  ;;  %p1015_p10 = scmp.lt.s32.totalorder %s1393_s21, %s1453_s7 }
 0x2f0   : > { %p1016_p4 = scmp.lt.s32.totalorder %s1014_s17, %s1010_s20 }
 0x2f1   : > { %p1012_p11 = pnand %p1011_p13, %p1232_p0 }
 0x2f2   : > { %p1017_p8 = por %p1016_p4, %p1015_p10 }
 0x2f3   : > { %p1013_p1 = pneg %p1012_p11 }
 0x2f5   : > { %p1018_p12 = pnand %p1017_p8, %p1013_p1 }
 0x2f7   : > { %1021 = shalt.err (!%p1018_p12)
}
 0x2f8   : > { %795 = dma.vmem_to_hbm [thread:$0]  (%p1232_p0), %s1387_s28, 256, %s1393_s21, %s1312_s27, %s1097_s13, %s1097_s13, %s1104_s30  }
 0x2f9 PF: > { %s1474_s11 = sld [smem:[#allocation16_spill]]  ;;  %s586_s10 = sand.u32 1, %s1064_s24  }
 0x2fa   : > { %p1476_p5 = scmp.ge.s32.totalorder %s1084_s29, 2  ;;  %s587_s19 = scalar_lea.sflag [#allocation4], %s586_s10 }
 0x2ff   : > { %p1475_p3 = scmp.ne.s32.totalorder %s1474_s11, 0 }
 0x301   : > { %p808_p7 = pnand %p1476_p5, %p1475_p3 }
 0x303   : > { %p809_p2 = pneg %p808_p7 }
 0x305   : > { %1055 = dma.done.wait (%p809_p2), %s587_s19, 256  }
 0x306   : > { %1057 = vsyncadd (%p809_p2), %s587_s19, 4294967040  ;;  %s1477_s23 = sadd.s32 4294967294, %s1084_s29  }
 0x307   : > { %s595_s12 = sand.u32 1, %s1477_s23  }
 0x308   : > { %s596_s3 = scalar_lea.sflag [#allocation9], %s595_s12 }
 0x309   : > { %1059 = dma.done.wait (%p809_p2), %s596_s3, 512  }
 0x30a   : > { %1061 = vsyncadd (%p809_p2), %s596_s3, 4294966784  ;;  %s28_s29 = sadd.s32 1, %s1084_s29   ;;  %s1478_s27 = sld [smem:[#allocation15_spill]] }
 0x30b   : > { %p25_p0 = scmp.ge.s32.totalorder %s28_s29, 4   ;;  %s1479_s28 = sld [smem:[#allocation17_spill]] }
 0x30c   : > { %s1480_s24 = smov %s1068_s25  ;;  %s1481_s25 = smov %s1072_s26 }
 0x30d   : > { %s1482_s26 = smov %s1241_s16  ;;  %27 = sbr.rel (!%p25_p0) target bundleno = 11 (0xb), region = 130 }
 0x312   :  { %610 = vsyncpa [#allocation3], 1 }
 0x313   :  { %612 = vsyncpa [#allocation3 + $0x1], 1 }
 0x314   :  { %613 = vsyncpa [#allocation6], 1 }
 0x315   :  { %614 = vsyncpa [#allocation4], 1 }
 0x316   :  { %616 = vsyncpa [#allocation4 + $0x1], 1 }
 0x317   :  { %617 = vsyncpa [#allocation9], 1 }
 0x318   :  { %619 = vsyncpa [#allocation9 + $0x1], 1 }

</bundles_post_ra>
